<compile_context>
chip_gen: v7x
topology: tpu7x:2x2x1
jax: 0.10.0
libtpu: 0.0.40
codegen_flags: <defaults>
</compile_context>

<pallas_src>
import functools

import jax
import jax.numpy as jnp
from jax.experimental import pallas as pl
from jax.experimental.pallas import tpu as pltpu

_LANE = 128
_SUBLANE = 8


def _round_up(v, m):
    return ((v + m - 1) // m) * m


def _mlp_pool_kernel(
    x_ref,        # [TN, C]    f32 point features (tile)
    pos_ref,      # [TN, 3]    f32 positions (tile)
    bidx_ref,     # [TN, 1]    int32 batch id per point (tile)
    w1x_ref,      # [C,   H1p] bf16   (x-part of layer-1 weight)
    w1p_ref,      # [3,   H1p] bf16   (pos-part of layer-1 weight)
    b1_ref,       # [1,   H1p] f32
    w2_ref,       # [H1p, H2p] bf16
    b2_ref,       # [1,   H2p] f32
    w3_ref,       # [H2p, H3p] bf16
    b3_ref,       # [1,   H3p] f32
    out_ref,      # [B_pad, H3p] f32   resident max accumulator
    *, num_batches, n_total, tile_n,
):
    # ---- init the resident accumulator on the first tile ----
    @pl.when(pl.program_id(0) == 0)
    def _():
        out_ref[...] = jnp.full_like(out_ref, -jnp.inf)

    # ---- point-wise MLP on this tile (bf16 MXU inputs, f32 accumulation) ----
    xb = x_ref[...].astype(jnp.bfloat16)
    pb = pos_ref[...].astype(jnp.bfloat16)
    h = (
        jnp.dot(xb, w1x_ref[...], preferred_element_type=jnp.float32)
        + jnp.dot(pb, w1p_ref[...], preferred_element_type=jnp.float32)
        + b1_ref[...]
    )
    h = jnp.maximum(h, 0.0)
    h = jnp.dot(h.astype(jnp.bfloat16), w2_ref[...],
                preferred_element_type=jnp.float32) + b2_ref[...]
    h = jnp.maximum(h, 0.0)
    # last layer is "plain" (no activation), matching MLP(plain_last=True)
    h = jnp.dot(h.astype(jnp.bfloat16), w3_ref[...],
                preferred_element_type=jnp.float32) + b3_ref[...]

    # ---- segmented max into the resident accumulator ----
    bidx = bidx_ref[...]                                            # [TN, 1] int32
    rows = (jax.lax.broadcasted_iota(jnp.int32, bidx.shape, 0)
            + pl.program_id(0) * tile_n)
    valid = rows < n_total                                          # mask padded tail rows
    # TODO(synk): for large num_batches, prefetch per-segment row offsets via
    #             PrefetchScalarGridSpec (sorted PyG batch vector) instead of this
    #             unrolled mask loop.
    for b in range(num_batches):
        mask = valid & (bidx == b)
        seg_max = jnp.max(jnp.where(mask, h, -jnp.inf),
                          axis=0, keepdims=True)                    # [1, H3p]
        out_ref[pl.ds(b, 1), :] = jnp.maximum(out_ref[pl.ds(b, 1), :], seg_max)


def _prep_params(params, c_in):
    """Split w1 into (x, pos) parts, zero-pad hidden dims to lane width (128),
    cast weights to bf16 (one-time host preprocessing). Biases stay f32."""
    w1, b1, w2, b2, w3, b3 = params
    h1, h2, h3 = w1.shape[1], w2.shape[1], w3.shape[1]
    h1p, h2p, h3p = (_round_up(d, _LANE) for d in (h1, h2, h3))

    def pad2(a, rows, cols):
        return jnp.pad(a, ((0, rows - a.shape[0]), (0, cols - a.shape[1])))

    w1x = pad2(w1[:c_in], c_in, h1p).astype(jnp.bfloat16)
    w1p = pad2(w1[c_in:], w1.shape[0] - c_in, h1p).astype(jnp.bfloat16)
    b1p = pad2(b1, 1, h1p).astype(jnp.float32)
    w2p = pad2(w2, h1p, h2p).astype(jnp.bfloat16)
    b2p = pad2(b2, 1, h2p).astype(jnp.float32)
    w3p = pad2(w3, h2p, h3p).astype(jnp.bfloat16)
    b3p = pad2(b3, 1, h3p).astype(jnp.float32)
    return (w1x, w1p, b1p, w2p, b2p, w3p, b3p), h3


@functools.partial(jax.jit, static_argnames=("num_batches", "out_dim", "tile_n"))
def _global_sa_pallas(x, pos, bidx, prepped, num_batches, out_dim, tile_n):
    n, c_in = x.shape
    w1x, w1p, b1, w2, b2, w3, b3 = prepped
    h1p, h2p, h3p = w1x.shape[1], w2.shape[1], w3.shape[1]

    # tile size along N: TN=2048 is safe for v7x's smaller VMEM; v5e/v6e can use
    # 4096-8192. Clamp for tiny inputs.
    tn = min(tile_n, _round_up(n, _SUBLANE))
    num_tiles = pl.cdiv(n, tn)
    b_pad = max(_SUBLANE, _round_up(num_batches, _SUBLANE))

    kernel = functools.partial(
        _mlp_pool_kernel, num_batches=num_batches, n_total=n, tile_n=tn)

    flops = 2 * n * (c_in * h1p + 3 * h1p + h1p * h2p + h2p * h3p)
    bytes_accessed = (
        n * (c_in + 3) * 4 + n * 4                                   # points + batch ids
        + 2 * (c_in * h1p + 3 * h1p + h1p * h2p + h2p * h3p)         # bf16 weights
        + 4 * (h1p + h2p + h3p)                                      # f32 biases
        + b_pad * h3p * 4)                                           # output

    grid_spec = pltpu.PrefetchScalarGridSpec(
        num_scalar_prefetch=0,
        grid=(num_tiles,),
        in_specs=[
            pl.BlockSpec((tn, c_in), lambda i: (i, 0)),
            pl.BlockSpec((tn, 3), lambda i: (i, 0)),
            pl.BlockSpec((tn, 1), lambda i: (i, 0)),
            # weights/biases: full arrays, constant block index -> stay resident
            pl.BlockSpec(w1x.shape, lambda i: (0, 0)),
            pl.BlockSpec(w1p.shape, lambda i: (0, 0)),
            pl.BlockSpec(b1.shape, lambda i: (0, 0)),
            pl.BlockSpec(w2.shape, lambda i: (0, 0)),
            pl.BlockSpec(b2.shape, lambda i: (0, 0)),
            pl.BlockSpec(w3.shape, lambda i: (0, 0)),
            pl.BlockSpec(b3.shape, lambda i: (0, 0)),
        ],
        out_specs=pl.BlockSpec((b_pad, h3p), lambda i: (0, 0)),      # accumulator
    )

    # TODO(synk): on v7x, add a leading "parallel" grid axis (split N per TensorCore)
    #             and combine the two per-core partial maxes in a tiny second pass.
    out_padded = pl.pallas_call(
        kernel,
        out_shape=jax.ShapeDtypeStruct((b_pad, h3p), jnp.float32),
        grid_spec=grid_spec,
        compiler_params=pltpu.CompilerParams(
            dimension_semantics=("arbitrary",),
            vmem_limit_bytes=32 * 1024 * 1024,
        ),
        cost_estimate=pl.CostEstimate(
            flops=flops, transcendentals=0, bytes_accessed=bytes_accessed),
    )(x, pos, bidx, w1x, w1p, b1, w2, b2, w3, b3)

    return out_padded[:num_batches, :out_dim]


def global_sa_forward(x, pos, batch, params, num_batches, tile_n=2048):
    """x: [N, C] f32, pos: [N, 3] f32, batch: [N] int (segment ids in [0, B))."""
    prepped, out_dim = _prep_params(params, x.shape[1])
    bidx = batch.astype(jnp.int32).reshape(-1, 1)
    x_out = _global_sa_pallas(
        x.astype(jnp.float32), pos.astype(jnp.float32), bidx,
        prepped, num_batches, out_dim, tile_n)
    pos_out = jnp.zeros((num_batches, 3), dtype=pos.dtype)
    batch_out = jnp.arange(num_batches, dtype=batch.dtype)
    return x_out, pos_out, batch_out


def _reference_forward(x, pos, batch, params, num_batches):
    """Pure-JAX f32 reference for correctness checking."""
    w1, b1, w2, b2, w3, b3 = params
    h = jnp.concatenate([x, pos], axis=1)
    h = jnp.maximum(h @ w1 + b1, 0.0)
    h = jnp.maximum(h @ w2 + b2, 0.0)
    h = h @ w3 + b3
    out = jnp.full((num_batches, h.shape[1]), -jnp.inf, dtype=h.dtype)
    out = out.at[batch].max(h)
    return out


def _init_params(key, dims):
    """Deterministic Linear params. dims = [Fin, H1, H2, H3]; weights stored as [in, out]."""
    params = []
    for i in range(len(dims) - 1):
        key, kw, kb = jax.random.split(key, 3)
        fan_in, fan_out = dims[i], dims[i + 1]
        scale = 1.0 / jnp.sqrt(jnp.float32(fan_in))
        w = jax.random.uniform(kw, (fan_in, fan_out), jnp.float32, -scale, scale)
        b = jax.random.uniform(kb, (1, fan_out), jnp.float32, -scale, scale)
        params += [w, b]
    return tuple(params)


if __name__ == "__main__":
    key = jax.random.PRNGKey(0)
    k_x, k_pos, k_params = jax.random.split(key, 3)

    N = 16          # total number of points
    C = 4           # input feature channels
    B = 2           # number of batch segments
    DIMS = [C + 3, 32, 64, 128]   # MLP: (C+3) -> 32 -> 64 -> 128

    x = jax.random.normal(k_x, (N, C), dtype=jnp.float32)
    pos = jax.random.normal(k_pos, (N, 3), dtype=jnp.float32)
    # uneven segments: first 10 points -> batch 0, last 6 -> batch 1
    batch = jnp.concatenate(
        [jnp.zeros((10,), jnp.int32), jnp.ones((6,), jnp.int32)]
    )
    params = _init_params(k_params, DIMS)

    # use a tiny tile (TN=8) so the multi-tile accumulating pipeline is exercised
    x_out, pos_out, batch_out = global_sa_forward(
        x, pos, batch, params, num_batches=B, tile_n=8)
    jax.block_until_ready((x_out, pos_out, batch_out))

    # correctness check vs. pure-JAX f32 reference (bf16 MXU -> looser tolerance)
    x_ref = _reference_forward(x, pos, batch, params, B)
    assert x_out.shape == (B, DIMS[-1])
    assert pos_out.shape == (B, 3) and bool(jnp.all(pos_out == 0.0))
    assert bool(jnp.all(batch_out == jnp.arange(B, dtype=batch.dtype)))
    assert jnp.allclose(x_out, x_ref, atol=5e-2, rtol=5e-2), (
        f"max err {float(jnp.max(jnp.abs(x_out - x_ref)))}")

    print("KERNEL_OK")
</pallas_src>

<mosaic_0001>
module attributes {stable_mosaic.version = 11 : i64} {
  func.func @_mlp_pool_kernel(%arg0: i32, %arg1: memref<8x4xf32, #tpu.memory_space<vmem>>, %arg2: memref<8x3xf32, #tpu.memory_space<vmem>>, %arg3: memref<8x1xi32, #tpu.memory_space<vmem>>, %arg4: memref<4x128xbf16, #tpu.memory_space<vmem>>, %arg5: memref<3x128xbf16, #tpu.memory_space<vmem>>, %arg6: memref<1x128xf32, #tpu.memory_space<vmem>>, %arg7: memref<128x128xbf16, #tpu.memory_space<vmem>>, %arg8: memref<1x128xf32, #tpu.memory_space<vmem>>, %arg9: memref<128x128xbf16, #tpu.memory_space<vmem>>, %arg10: memref<1x128xf32, #tpu.memory_space<vmem>>, %arg11: memref<8x128xf32, #tpu.memory_space<vmem>>) attributes {dimension_semantics = [#tpu.dimension_semantics<arbitrary>], iteration_bounds = array<i64: 2>, scalar_prefetch = 0 : i64, scratch_operands = 0 : i64, tpu.core_type = #tpu.core_type<tc>, window_params = [{transform_indices = @transform_0, window_bounds = array<i64: 8, 4>}, {transform_indices = @transform_1, window_bounds = array<i64: 8, 3>}, {transform_indices = @transform_2, window_bounds = array<i64: 8, 1>}, {pipeline_mode = #tpu.pipeline_mode<synchronous>, transform_indices = @transform_3, window_bounds = array<i64: 4, 128>}, {pipeline_mode = #tpu.pipeline_mode<synchronous>, transform_indices = @transform_4, window_bounds = array<i64: 3, 128>}, {pipeline_mode = #tpu.pipeline_mode<synchronous>, transform_indices = @transform_5, window_bounds = array<i64: 1, 128>}, {pipeline_mode = #tpu.pipeline_mode<synchronous>, transform_indices = @transform_6, window_bounds = array<i64: 128, 128>}, {pipeline_mode = #tpu.pipeline_mode<synchronous>, transform_indices = @transform_7, window_bounds = array<i64: 1, 128>}, {pipeline_mode = #tpu.pipeline_mode<synchronous>, transform_indices = @transform_8, window_bounds = array<i64: 128, 128>}, {pipeline_mode = #tpu.pipeline_mode<synchronous>, transform_indices = @transform_9, window_bounds = array<i64: 1, 128>}, {pipeline_mode = #tpu.pipeline_mode<synchronous>, transform_indices = @transform_10, window_bounds = array<i64: 8, 128>}]} {
    %c0_i32 = arith.constant 0 : i32
    %0 = arith.cmpi eq, %arg0, %c0_i32 : i32
    %1 = arith.extui %0 : i1 to i32
    %c0_i32_0 = arith.constant 0 : i32
    %2 = arith.cmpi ne, %1, %c0_i32_0 : i32
    scf.if %2 {
      %cst_37 = arith.constant 0xFF800000 : f32
      %62 = vector.broadcast %cst_37 : f32 to vector<8x128xf32>
      %c0_38 = arith.constant 0 : index
      %c0_39 = arith.constant 0 : index
      %63 = vector.load %arg11[%c0_38, %c0_39] : memref<8x128xf32, #tpu.memory_space<vmem>>, vector<8x128xf32>
      tpu.vector_store %arg11[%c0_38, %c0_39], %62 {strides = array<i32>} : memref<8x128xf32, #tpu.memory_space<vmem>>, vector<8x128xf32>,
    } else {
    }
    %c0 = arith.constant 0 : index
    %c0_1 = arith.constant 0 : index
    %3 = vector.load %arg1[%c0, %c0_1] : memref<8x4xf32, #tpu.memory_space<vmem>>, vector<8x4xf32>
    %4 = arith.truncf %3 : vector<8x4xf32> to vector<8x4xbf16>
    %c0_2 = arith.constant 0 : index
    %c0_3 = arith.constant 0 : index
    %5 = vector.load %arg2[%c0_2, %c0_3] : memref<8x3xf32, #tpu.memory_space<vmem>>, vector<8x3xf32>
    %6 = arith.truncf %5 : vector<8x3xf32> to vector<8x3xbf16>
    %c0_4 = arith.constant 0 : index
    %c0_5 = arith.constant 0 : index
    %7 = vector.load %arg4[%c0_4, %c0_5] : memref<4x128xbf16, #tpu.memory_space<vmem>>, vector<4x128xbf16>
    %cst = arith.constant dense<0.000000e+00> : vector<8x128xf32>
    %8 = tpu.matmul %4, %7, %cst {dimension_numbers = #tpu.dot_dimension_numbers<[1], [0], [0], [1], [0, 0, 1, 1], [], []>} : vector<8x4xbf16>, vector<4x128xbf16>, vector<8x128xf32> -> vector<8x128xf32>
    %c0_6 = arith.constant 0 : index
    %c0_7 = arith.constant 0 : index
    %9 = vector.load %arg5[%c0_6, %c0_7] : memref<3x128xbf16, #tpu.memory_space<vmem>>, vector<3x128xbf16>
    %cst_8 = arith.constant dense<0.000000e+00> : vector<8x128xf32>
    %10 = tpu.matmul %6, %9, %cst_8 {dimension_numbers = #tpu.dot_dimension_numbers<[1], [0], [0], [1], [0, 0, 1, 1], [], []>} : vector<8x3xbf16>, vector<3x128xbf16>, vector<8x128xf32> -> vector<8x128xf32>
    %11 = arith.addf %8, %10 : vector<8x128xf32>
    %c0_9 = arith.constant 0 : index
    %c0_10 = arith.constant 0 : index
    %12 = vector.load %arg6[%c0_9, %c0_10] : memref<1x128xf32, #tpu.memory_space<vmem>>, vector<1x128xf32>
    %13 = vector.broadcast %12 : vector<1x128xf32> to vector<8x128xf32>
    %14 = arith.addf %11, %13 : vector<8x128xf32>
    %cst_11 = arith.constant 0.000000e+00 : f32
    %15 = vector.broadcast %cst_11 : f32 to vector<8x128xf32>
    %16 = arith.maximumf %14, %15 : vector<8x128xf32>
    %17 = arith.truncf %16 : vector<8x128xf32> to vector<8x128xbf16>
    %c0_12 = arith.constant 0 : index
    %c0_13 = arith.constant 0 : index
    %18 = vector.load %arg7[%c0_12, %c0_13] : memref<128x128xbf16, #tpu.memory_space<vmem>>, vector<128x128xbf16>
    %cst_14 = arith.constant dense<0.000000e+00> : vector<8x128xf32>
    %19 = tpu.matmul %17, %18, %cst_14 {dimension_numbers = #tpu.dot_dimension_numbers<[1], [0], [0], [1], [0, 0, 1, 1], [], []>} : vector<8x128xbf16>, vector<128x128xbf16>, vector<8x128xf32> -> vector<8x128xf32>
    %c0_15 = arith.constant 0 : index
    %c0_16 = arith.constant 0 : index
    %20 = vector.load %arg8[%c0_15, %c0_16] : memref<1x128xf32, #tpu.memory_space<vmem>>, vector<1x128xf32>
    %21 = vector.broadcast %20 : vector<1x128xf32> to vector<8x128xf32>
    %22 = arith.addf %19, %21 : vector<8x128xf32>
    %cst_17 = arith.constant 0.000000e+00 : f32
    %23 = vector.broadcast %cst_17 : f32 to vector<8x128xf32>
    %24 = arith.maximumf %22, %23 : vector<8x128xf32>
    %25 = arith.truncf %24 : vector<8x128xf32> to vector<8x128xbf16>
    %c0_18 = arith.constant 0 : index
    %c0_19 = arith.constant 0 : index
    %26 = vector.load %arg9[%c0_18, %c0_19] : memref<128x128xbf16, #tpu.memory_space<vmem>>, vector<128x128xbf16>
    %cst_20 = arith.constant dense<0.000000e+00> : vector<8x128xf32>
    %27 = tpu.matmul %25, %26, %cst_20 {dimension_numbers = #tpu.dot_dimension_numbers<[1], [0], [0], [1], [0, 0, 1, 1], [], []>} : vector<8x128xbf16>, vector<128x128xbf16>, vector<8x128xf32> -> vector<8x128xf32>
    %c0_21 = arith.constant 0 : index
    %c0_22 = arith.constant 0 : index
    %28 = vector.load %arg10[%c0_21, %c0_22] : memref<1x128xf32, #tpu.memory_space<vmem>>, vector<1x128xf32>
    %29 = vector.broadcast %28 : vector<1x128xf32> to vector<8x128xf32>
    %30 = arith.addf %27, %29 : vector<8x128xf32>
    %c0_23 = arith.constant 0 : index
    %c0_24 = arith.constant 0 : index
    %31 = vector.load %arg3[%c0_23, %c0_24] : memref<8x1xi32, #tpu.memory_space<vmem>>, vector<8x1xi32>
    %32 = tpu.iota {dimensions = array<i32: 0>} : vector<8x1xi32>
    %c8_i32 = arith.constant 8 : i32
    %33 = arith.muli %arg0, %c8_i32 : i32
    %34 = vector.broadcast %33 : i32 to vector<8x1xi32>
    %35 = arith.addi %32, %34 : vector<8x1xi32>
    %c16_i32 = arith.constant 16 : i32
    %36 = vector.broadcast %c16_i32 : i32 to vector<8x1xi32>
    %37 = arith.cmpi slt, %35, %36 : vector<8x1xi32>
    %c0_i32_25 = arith.constant 0 : i32
    %38 = vector.broadcast %c0_i32_25 : i32 to vector<8x1xi32>
    %39 = arith.cmpi eq, %31, %38 : vector<8x1xi32>
    %40 = arith.andi %37, %39 : vector<8x1xi1>
    %cst_26 = arith.constant 0xFF800000 : f32
    %41 = vector.shape_cast %40 : vector<8x1xi1> to vector<8x1xi1>
    %42 = vector.broadcast %41 : vector<8x1xi1> to vector<8x128xi1>
    %43 = vector.broadcast %cst_26 : f32 to vector<8x128xf32>
    %44 = arith.select %42, %30, %43 : vector<8x128xi1>, vector<8x128xf32>
    %cst_27 = arith.constant dense<0xFF800000> : vector<128xf32>
    %45 = vector.multi_reduction <maximumf>, %44, %cst_27 [0] : vector<8x128xf32> to vector<128xf32>
    %46 = vector.shape_cast %45 : vector<128xf32> to vector<1x128xf32>
    %c0_28 = arith.constant 0 : index
    %c0_29 = arith.constant 0 : index
    %47 = vector.load %arg11[%c0_28, %c0_29] : memref<8x128xf32, #tpu.memory_space<vmem>>, vector<1x128xf32>
    %48 = arith.maximumf %47, %46 : vector<1x128xf32>
    %c0_30 = arith.constant 0 : index
    %c0_31 = arith.constant 0 : index
    %49 = vector.load %arg11[%c0_30, %c0_31] : memref<8x128xf32, #tpu.memory_space<vmem>>, vector<1x128xf32>
    tpu.vector_store %arg11[%c0_30, %c0_31], %48 {strides = array<i32>} : memref<8x128xf32, #tpu.memory_space<vmem>>, vector<1x128xf32>,
    %c1_i32 = arith.constant 1 : i32
    %50 = vector.broadcast %c1_i32 : i32 to vector<8x1xi32>
    %51 = arith.cmpi eq, %31, %50 : vector<8x1xi32>
    %52 = arith.andi %37, %51 : vector<8x1xi1>
    %cst_32 = arith.constant 0xFF800000 : f32
    %53 = vector.shape_cast %52 : vector<8x1xi1> to vector<8x1xi1>
    %54 = vector.broadcast %53 : vector<8x1xi1> to vector<8x128xi1>
    %55 = vector.broadcast %cst_32 : f32 to vector<8x128xf32>
    %56 = arith.select %54, %30, %55 : vector<8x128xi1>, vector<8x128xf32>
    %cst_33 = arith.constant dense<0xFF800000> : vector<128xf32>
    %57 = vector.multi_reduction <maximumf>, %56, %cst_33 [0] : vector<8x128xf32> to vector<128xf32>
    %58 = vector.shape_cast %57 : vector<128xf32> to vector<1x128xf32>
    %c1 = arith.constant 1 : index
    %c0_34 = arith.constant 0 : index
    %59 = vector.load %arg11[%c1, %c0_34] : memref<8x128xf32, #tpu.memory_space<vmem>>, vector<1x128xf32>
    %60 = arith.maximumf %59, %58 : vector<1x128xf32>
    %c1_35 = arith.constant 1 : index
    %c0_36 = arith.constant 0 : index
    %61 = vector.load %arg11[%c1_35, %c0_36] : memref<8x128xf32, #tpu.memory_space<vmem>>, vector<1x128xf32>
    tpu.vector_store %arg11[%c1_35, %c0_36], %60 {strides = array<i32>} : memref<8x128xf32, #tpu.memory_space<vmem>>, vector<1x128xf32>,
    return
  }
  func.func @transform_0(%arg0: i32) -> (i32, i32) {
    %c0_i32 = arith.constant 0 : i32
    %c0_i32_0 = arith.constant 0 : i32
    return %arg0, %c0_i32 : i32, i32
  }
  func.func @transform_1(%arg0: i32) -> (i32, i32) {
    %c0_i32 = arith.constant 0 : i32
    %c0_i32_0 = arith.constant 0 : i32
    return %arg0, %c0_i32 : i32, i32
  }
  func.func @transform_2(%arg0: i32) -> (i32, i32) {
    %c0_i32 = arith.constant 0 : i32
    %c0_i32_0 = arith.constant 0 : i32
    return %arg0, %c0_i32 : i32, i32
  }
  func.func @transform_3(%arg0: i32) -> (i32, i32) {
    %c0_i32 = arith.constant 0 : i32
    %c0_i32_0 = arith.constant 0 : i32
    %c0_i32_1 = arith.constant 0 : i32
    return %c0_i32, %c0_i32_0 : i32, i32
  }
  func.func @transform_4(%arg0: i32) -> (i32, i32) {
    %c0_i32 = arith.constant 0 : i32
    %c0_i32_0 = arith.constant 0 : i32
    %c0_i32_1 = arith.constant 0 : i32
    return %c0_i32, %c0_i32_0 : i32, i32
  }
  func.func @transform_5(%arg0: i32) -> (i32, i32) {
    %c0_i32 = arith.constant 0 : i32
    %c0_i32_0 = arith.constant 0 : i32
    %c0_i32_1 = arith.constant 0 : i32
    return %c0_i32, %c0_i32_0 : i32, i32
  }
  func.func @transform_6(%arg0: i32) -> (i32, i32) {
    %c0_i32 = arith.constant 0 : i32
    %c0_i32_0 = arith.constant 0 : i32
    %c0_i32_1 = arith.constant 0 : i32
    return %c0_i32, %c0_i32_0 : i32, i32
  }
  func.func @transform_7(%arg0: i32) -> (i32, i32) {
    %c0_i32 = arith.constant 0 : i32
    %c0_i32_0 = arith.constant 0 : i32
    %c0_i32_1 = arith.constant 0 : i32
    return %c0_i32, %c0_i32_0 : i32, i32
  }
  func.func @transform_8(%arg0: i32) -> (i32, i32) {
    %c0_i32 = arith.constant 0 : i32
    %c0_i32_0 = arith.constant 0 : i32
    %c0_i32_1 = arith.constant 0 : i32
    return %c0_i32, %c0_i32_0 : i32, i32
  }
  func.func @transform_9(%arg0: i32) -> (i32, i32) {
    %c0_i32 = arith.constant 0 : i32
    %c0_i32_0 = arith.constant 0 : i32
    %c0_i32_1 = arith.constant 0 : i32
    return %c0_i32, %c0_i32_0 : i32, i32
  }
  func.func @transform_10(%arg0: i32) -> (i32, i32) {
    %c0_i32 = arith.constant 0 : i32
    %c0_i32_0 = arith.constant 0 : i32
    %c0_i32_1 = arith.constant 0 : i32
    return %c0_i32, %c0_i32_0 : i32, i32
  }
}

</mosaic_0001>

<bundles_post_ra>
// kernel: _global_sa_pallas.1
= control target key start
LH: loop header
LB: loop body
LE: loop exit
PB: predicated region body
PF: predicated region fallthrough
CT: control target
= control target key end

     0   :  { %15 = vsyncpa [#allocation3], 0  ;;  %s1094_s13 = smov 0   ;;  %s1249_s0 = inlined_call_operand.vmem [shape: f32[16,4], index: 0, kind: input, shape index: {}]   ;;  %s1250_s1 = inlined_call_operand.vmem [shape: f32[16,3], index: 1, kind: input, shape index: {}]   ;;  %s1251_s2 = inlined_call_operand.vmem [shape: s32[16,1], index: 2, kind: input, shape index: {}]   ;;  %s1252_s3 = inlined_call_operand.vmem [shape: bf16[4,128], index: 3, kind: input, shape index: {}]   ;;  %s1253_s4 = inlined_call_operand.vmem [shape: bf16[3,128], index: 4, kind: input, shape index: {}]   ;;  %s1254_s5 = inlined_call_operand.vmem [shape: f32[1,128], index: 5, kind: input, shape index: {}]   ;;  %s1255_s6 = inlined_call_operand.vmem [shape: bf16[128,128], index: 6, kind: input, shape index: {}]   ;;  %s1256_s7 = inlined_call_operand.vmem [shape: f32[1,128], index: 7, kind: input, shape index: {}]   ;;  %s1257_s8 = inlined_call_operand.hbm [shape: bf16[128,128], index: 8, kind: input, shape index: {}]   ;;  %s1258_s9 = inlined_call_operand.vmem [shape: f32[1,128], index: 9, kind: input, shape index: {}]   ;;  %s1259_s10 = inlined_call_operand.vmem [shape: f32[8,128], index: 10, kind: output, shape index: {}]  }
   0x1 LB: > { %s1100_s14 = sadd.s32 4294967295, %s1029_s13   ;;  %p841_p0 = scmp.ge.s32.totalorder %s1029_s13, 1  ;;  %s1029_s13 = sphi %s1094_s13, %s21_s13  }
   0x2   : > { %p272_p1 = scmp.lt.s32.totalorder %s1029_s13, 3  ;;  %s1031_s15 = smov [#allocation2]  }
   0x3   : > { %s299_s16 = sshll.u32 %s1031_s15, 4  ;;  %p1260_p4 = scmp.eq.s32.totalorder %s1100_s14, 0  ;;  %s300_s16 = int_to_ptr.vmem [resolvable:$true] %s299_s16 }
   0x4   : > { %p1105_p3 = pnand %p841_p0, %p272_p1  ;;  %s991_s21 = scalar_lea.hbm %s1257_s8, 1024 }
   0x5   : > { %p992_p7 = scmp.ne.s32.totalorder %s1257_s8, %s991_s21  ;;  %p998_p11 = scmp.lt.u32.totalorder %s991_s21, %s1257_s8 }
   0x6   : > { %s1262_s17 = scalar_select %p1105_p3, 1, 0 }
   0x7   : > { %p952_p5 = pneg %p1105_p3 }
   0x9   : > { %p1114_p6 = pnand %p1260_p4, %p952_p5 }
   0xb   : > { %p993_p8 = pneg %p1114_p6 }
   0xd   : > { %p994_p9 = pnand %p993_p8, %p992_p7 }
   0xf   : > { %p995_p10 = pneg %p994_p9 }
  0x11   : > { %p1000_p12 = pnand %p998_p11, %p995_p10 }
  0x13   : > { %1003 = shalt.err (!%p1000_p12)
}
  0x14   : > { %s1004_s26 = scalar_lea.vmem %s300_s16, 1024  ;;  %p1012_p5 = scmp.lt.s32.totalorder %s300_s16, %s300_s16 }
  0x15   : > { %p1005_p13 = scmp.ne.s32.totalorder %s300_s16, %s1004_s26  ;;  %p1013_p2 = scmp.lt.s32.totalorder %s1004_s26, %s1004_s26 }
  0x17   : > { %p1007_p0 = pnand %p1005_p13, %p993_p8  ;;  %p1014_p4 = por %p1013_p2, %p1012_p5 }
  0x19   : > { %p1008_p1 = pneg %p1007_p0 }
  0x1b   : > { %p1015_p3 = pnand %p1014_p4, %p1008_p1 }
  0x1d   : > { %1018 = shalt.err (!%p1015_p3)
}
  0x1e   : > { %s1032_s27 = smov 64   ;;  %s1033_s28 = smov 4  }
  0x1f   : > { %955 = dma.hbm_to_vmem [thread:$0]  (!%p1114_p6), %s1257_s8, 1024, %s300_s16, [#allocation3], %s1032_s27, %s1032_s27, %s1033_s28  }
  0x20   : > { %p1264_p7 = scmp.ne.s32.totalorder %s1262_s17, 0 }
  0x21   : > { %p1265_p9 = scmp.eq.s32.totalorder (!%p1264_p7), %s1100_s14, 0 }
  0x22   : > { %339 = sbr.rel (%p1264_p7) target bundleno = 729 (0x2d9), region = 60 }
  0x29   : > { %1024 = dma.done.wait (%p1265_p9), [#allocation3], 1024   ;;  %p1266_p8 = pmov %p1265_p9 }
  0x2a   : > { %p379_p2 = scmp.lt.s32.totalorder %s1100_s14, 1  ;;  %p1267_p3 = scmp.ne.s32.totalorder %s1100_s14, 0 }
  0x2b   : > { %1026 = vsyncadd (%p1266_p8), [#allocation3], 4294966272  ;;  %v1034_v0 = vmov (!%p1267_p3), -inf  }
  0x2c   : > { %s380_s11 = scalar_select %p379_p2, %s1100_s14, 1 }
  0x2d   : > { %395 = sbr.rel (%p1267_p3) target bundleno = 52 (0x34), region = 68  ;;  %396 = vst [vmem:[%s1259_s10] sm:$0xff] (!%p1267_p3), %v1034_v0 }
  0x2e   : > { %s1142_s12 = sshll.u32 %s380_s11, 3 }
  0x2f   : > { %s382_s16 = scalar_lea.vmem %s1249_s0, %s1142_s12  ;;  %s386_s20 = scalar_lea.vmem %s1250_s1, %s1142_s12 }
  0x30   : > { %s390_s23 = scalar_lea.vmem %s1251_s2, %s1142_s12 }
  0x34 PF: > { %v401_v1 = vld [vmem:[%s1252_s3] sm:$0x3]  ;;  %vm408_vm0 = vcmask 1041408   ;;  %vm407_vm1 = vcmask 1040384   ;;  %v1035_v2 = vmov 0.0   ;;  %vm1036_vm2 = vmmov 0  }
  0x35   : > { %902 = vmatprep.subr.bf16.mxu1 %v1035_v2  ;;  %v459_v3 = vsel %vm408_vm0, %v401_v1, 0  ;;  %896 = vmatprep.subr.bf16.mxu0 %v1035_v2  ;;  %v402_v4 = vld [vmem:[%s1253_s4] sm:$0x3]  ;;  %v1037_v6 = vmov 65535   ;;  %vm454_vm3 = vcmask 31744   ;;  %vm403_vm4 = vcmask 23552  }
  0x36   : > { %v397_v5 = vld [vmem:[%s382_s16] sm:$0xff]  ;;  %903 = vmatpush3.bf16.msra.mxu1 %v459_v3  ;;  %904 = vmatprep.mubr.msk.bf16.mxu1 %vm1036_vm2, %v1035_v2  ;;  %v409_v7 = vsel %vm407_vm1, 4294967295, %v1037_v6  ;;  %v976_v14 = vld [vmem:[%s1255_s6 + $0x8] sm:$0xff]   ;;  %v977_v15 = vld [vmem:[%s1255_s6 + $0x10] sm:$0xff]   ;;  %v736_v42 = vlaneseq  ;;  %s871_s15 = sshll.u32 %s1100_s14, 3  ;;  %v1038_v43 = vmov 0  }
  0x37   : > { %v398_v8 = vpack.c.bf16 %v397_v5, %v397_v5  ;;  %v399_v9 = vld [vmem:[%s386_s20] sm:$0xff]  ;;  %v410_v10 = vsel %vm408_vm0, %v409_v7, 0  ;;  %898 = vmatprep.mubr.msk.bf16.mxu0 %vm1036_vm2, %v1035_v2  ;;  %928 = vmatprep.subr.bf16.mxu1 %v1035_v2  ;;  %v978_v16 = vld [vmem:[%s1255_s6 + $0x18] sm:$0xff]   ;;  %v980_v18 = vld [vmem:[%s1255_s6 + $0x28] sm:$0xff]   ;;  %v739_v45 = vstv %s871_s15 }
  0x38   : > { %v412_v11 = vand.u32 %v410_v10, %v402_v4  ;;  %v400_v12 = vpack.c.bf16 %v399_v9, %v399_v9  ;;  %v975_v13 = vld [vmem:[%s1255_s6] sm:$0xff]   ;;  %v981_v19 = vld [vmem:[%s1255_s6 + $0x30] sm:$0xff]   ;;  %v982_v20 = vld [vmem:[%s1255_s6 + $0x38] sm:$0xff]   ;;  %974 = vset.pattern.permute.xlu0 %v1038_v43  ;;  %v737_v46 = vshrl.u32 %v736_v42, 7 }
  0x39   : > { %905 = vmatmul.mubr.msk.bf16.vlgmr.msra.gmra.mrb[0].mxu1 %vm454_vm3, %v398_v8  ;;  %v979_v17 = vld [vmem:[%s1255_s6 + $0x20] sm:$0xff]   ;;  %v984_v22 = vld [vmem:[#allocation2 + $0x8] sm:$0xff]   ;;  %v985_v23 = vld [vmem:[#allocation2 + $0x10] sm:$0xff]  }
  0x3a   : > { %897 = vmatpush3.bf16.msra.mxu0 %v412_v11  ;;  %944 = vmatprep.mubr.msk.bf16.mxu1 %vm1036_vm2, %v1035_v2  ;;  %v983_v21 = vld [vmem:[#allocation2] sm:$0xff]   ;;  %v986_v24 = vld [vmem:[#allocation2 + $0x18] sm:$0xff]   ;;  %v988_v26 = vld [vmem:[#allocation2 + $0x28] sm:$0xff]   ;;  %v740_v47 = vadd.s32 %v739_v45, %v737_v46 }
  0x3b   : > { %908 = vmatprep.subr.bf16.mxu0 %v1035_v2  ;;  %929 = vmatpush3.bf16.msra.mxu1 %v983_v21  ;;  %v987_v25 = vld [vmem:[#allocation2 + $0x20] sm:$0xff]   ;;  %v989_v40 = vld [vmem:[#allocation2 + $0x30] sm:$0xff]   ;;  %v990_v41 = vld [vmem:[#allocation2 + $0x38] sm:$0xff]  }
  0x3c   : > { %930 = vmatprep.subr.bf16.mxu1 %v1035_v2  ;;  %v852_v32 = vld [vmem:[%s1254_s5] ss:$0 sm:$0xff]  ;;  %vm741_vm7 = vcmp.lt.s32.totalorder %v740_v47, 16 }
  0x3d   : > { %899 = vmatmul.mubr.msk.bf16.vlgmr.msra.gmra.mrb[0].mxu0 %vm403_vm4, %v400_v12  ;;  %v735_v44 = vld [vmem:[%s390_s23] sm:$0xff] }
  0x3e   : > { %909 = vmatpush3.bf16.msra.mxu0 %v975_v13  ;;  %924 = vmatprep.mubr.msk.bf16.mxu0 %vm1036_vm2, %v1035_v2  ;;  %vm742_vm5 = vcmp.eq.s32.totalorder %v735_v44, 0  ;;  %vm759_vm6 = vcmp.eq.s32.totalorder %v735_v44, 1  ;;  %v853_v50 = vld [vmem:[%s1256_s7] ss:$0 sm:$0xff] }
  0x3f   : > { %910 = vmatprep.subr.bf16.mxu0 %v1035_v2  ;;  %931 = vmatpush3.bf16.msra.mxu1 %v984_v22  ;;  %vm743_vm8 = vmand %vm741_vm7, %vm742_vm5  ;;  %v862_v59 = vld [vmem:[%s1258_s9] ss:$0 sm:$0xff] }
  0x40   : > { %932 = vmatprep.subr.bf16.mxu1 %v1035_v2  ;;  %v744_v48 = vsel %vm743_vm8, 1, %v1038_v43  ;;  %vm760_vm9 = vmand %vm741_vm7, %vm759_vm6 }
  0x41   : > { %746 = vperm.xlu0 %974, %v744_v48   ;;  %v761_v49 = vsel %vm760_vm9, 1, %v1038_v43 }
  0x42   : > { %911 = vmatpush3.bf16.msra.mxu0 %v976_v14  ;;  %v756_v14 = vld [vmem:[%s1259_s10] sm:$0x1] }
  0x43   : > { %912 = vmatprep.subr.bf16.mxu0 %v1035_v2  ;;  %933 = vmatpush3.bf16.msra.mxu1 %v985_v23 }
  0x44   : > { %934 = vmatprep.subr.bf16.mxu1 %v1035_v2 }
  0x45   : > { %763 = vperm.xlu0 %974, %v761_v49  }
  0x46   : > { %913 = vmatpush3.bf16.msra.mxu0 %v977_v15  ;;  %v773_v15 = vld [vmem:[%s1259_s10 + $0x1] sm:$0x1] }
  0x47   : > { %914 = vmatprep.subr.bf16.mxu0 %v1035_v2  ;;  %935 = vmatpush3.bf16.msra.mxu1 %v986_v24 }
  0x48   : > { %936 = vmatprep.subr.bf16.mxu1 %v1035_v2 }
  0x4a   : > { %915 = vmatpush3.bf16.msra.mxu0 %v978_v16 }
  0x4b   : > { %916 = vmatprep.subr.bf16.mxu0 %v1035_v2  ;;  %937 = vmatpush3.bf16.msra.mxu1 %v987_v25 }
  0x4c   : > { %938 = vmatprep.subr.bf16.mxu1 %v1035_v2 }
  0x4e   : > { %917 = vmatpush3.bf16.msra.mxu0 %v979_v17 }
  0x4f   : > { %918 = vmatprep.subr.bf16.mxu0 %v1035_v2  ;;  %939 = vmatpush3.bf16.msra.mxu1 %v988_v26 }
  0x50   : > { %940 = vmatprep.subr.bf16.mxu1 %v1035_v2 }
  0x52   : > { %919 = vmatpush3.bf16.msra.mxu0 %v980_v18 }
  0x53   : > { %920 = vmatprep.subr.bf16.mxu0 %v1035_v2  ;;  %941 = vmatpush3.bf16.msra.mxu1 %v989_v40 }
  0x54   : > { %942 = vmatprep.subr.bf16.mxu1 %v1035_v2 }
  0x56   : > { %921 = vmatpush3.bf16.msra.mxu0 %v981_v19 }
  0x57   : > { %922 = vmatprep.subr.bf16.mxu0 %v1035_v2  ;;  %943 = vmatpush3.bf16.msra.mxu1 %v990_v41 }
  0x5a   : > { %923 = vmatpush3.bf16.msra.mxu0 %v982_v20 }
  0xc0   : > { %v747_v58 = vpop.permute.xlu0 %746 }
  0xc1   : > { %vm748_vm10 = vcmp.eq.s32.totalorder %v747_v58, 1 }
  0xc4   : > { %v764_v60 = vpop.permute.xlu0 %763 }
  0xc5   : > { %vm765_vm11 = vcmp.eq.s32.totalorder %v764_v60, 1 }
 0x10c   : > { %v495_v27 = vpop.f32.mrb[0].mxu1 }
 0x10d   : > { %v906_v28 = vpop.f32.mrb[1].mxu1 }
 0x10e   : > { %v498_v29 = vpop.f32.mrb[2].mxu1 }
 0x10f   : > { %v907_v30 = vpop.f32.mrb[3].mxu1 }
 0x110   : > { %v448_v31 = vpop.f32.mrb[0].mxu0 }
 0x111   : > { %v496_v33 = vadd.f32 %v495_v27, %v448_v31  ;;  %v900_v34 = vpop.f32.mrb[1].mxu0 }
 0x112   : > { %v451_v35 = vpop.f32.mrb[2].mxu0 }
 0x113   : > { %v508_v36 = vadd.f32 %v852_v32, %v496_v33  ;;  %v901_v37 = vpop.f32.mrb[3].mxu0 }
 0x115   : > { %v509_v38 = vmax.f32 %v508_v36, 0.0 }
 0x117   : > { %v510_v39 = vpack.c.bf16 %v509_v38, %v509_v38 }
 0x119   : > { %925 = vmatmul.mubr.bf16.vlgmr.msra.gmra.mrb[4].mxu0 %v510_v39 }
 0x1ec   : > { %v616_v51 = vpop.f32.mrb[4].mxu0 }
 0x1ed   : > { %v617_v52 = vadd.f32 %v853_v50, %v616_v51  ;;  %v926_v53 = vpop.f32.mrb[5].mxu0 }
 0x1ee   : > { %v619_v54 = vpop.f32.mrb[6].mxu0 }
 0x1ef   : > { %v622_v55 = vmax.f32 %v617_v52, 0.0  ;;  %v927_v56 = vpop.f32.mrb[7].mxu0 }
 0x1f1   : > { %v623_v57 = vpack.c.bf16 %v622_v55, %v622_v55 }
 0x1f3   : > { %945 = vmatmul.mubr.bf16.vlgmr.msra.gmra.mrb[4].mxu1 %v623_v57 }
 0x2c6   : > { %v729_v61 = vpop.f32.mrb[4].mxu1 }
 0x2c7   : > { %v730_v62 = vadd.f32 %v862_v59, %v729_v61  ;;  %v946_v63 = vpop.f32.mrb[5].mxu1 }
 0x2c8   : > { %v732_v0 = vpop.f32.mrb[6].mxu1 }
 0x2c9   : > { %v749_v1 = vsel %vm748_vm10, %v730_v62, -inf  ;;  %v766_v2 = vsel %vm765_vm11, %v730_v62, -inf  ;;  %v947_v3 = vpop.f32.mrb[7].mxu1 }
 0x2ca   : > { %v750_v4 = vrot.slane %v749_v1, 4  ;;  %v767_v5 = vrot.slane %v766_v2, 4 }
 0x2cc   : > { %v751_v6 = vmax.f32 %v749_v1, %v750_v4  ;;  %v768_v7 = vmax.f32 %v766_v2, %v767_v5 }
 0x2ce   : > { %v752_v8 = vrot.slane %v751_v6, 2  ;;  %v769_v9 = vrot.slane %v768_v7, 2 }
 0x2d0   : > { %v753_v10 = vmax.f32 %v751_v6, %v752_v8  ;;  %v770_v11 = vmax.f32 %v768_v7, %v769_v9 }
 0x2d2   : > { %v754_v12 = vrot.slane %v753_v10, 1  ;;  %v771_v13 = vrot.slane %v770_v11, 1 }
 0x2d4   : > { %v755_v16 = vmax.f32 %v753_v10, %v754_v12  ;;  %v772_v17 = vmax.f32 %v770_v11, %v771_v13 }
 0x2d6   : > { %v757_v18 = vmax.f32 %v756_v14, %v755_v16  ;;  %v774_v19 = vmax.f32 %v773_v15, %v772_v17 }
 0x2d8   : > { %758 = vst [vmem:[%s1259_s10] sm:$0x1] %v757_v18  ;;  %775 = vst [vmem:[%s1259_s10 + $0x1] sm:$0x1] %v774_v19 }
 0x2d9 PF: > { %s21_s13 = sadd.s32 1, %s1029_s13  }
 0x2da   : > { %p18_p4 = scmp.ge.s32.totalorder %s21_s13, 4  }
 0x2dc   :  { %20 = sbr.rel (!%p18_p4) target bundleno = 1 (0x1), region = 101 }
 0x2e3   :  { %787 = vsyncpa [#allocation3], 1 }
 0x2e4   :  { %789 = vsyncpa [#allocation3 + $0x1], 1 }

</bundles_post_ra>
